<compile_context>
chip_gen: v7x
topology: tpu7x:2x2x1
jax: 0.10.0
libtpu: 0.0.40
codegen_flags: <defaults>
</compile_context>

<pallas_src>
import functools

import jax
import jax.numpy as jnp
from jax.experimental import pallas as pl
from jax.experimental.pallas import tpu as pltpu


def _round_up(x, m):
    return (x + m - 1) // m * m


def _heads_kernel(feat_ref, w_heads_ref, b_heads_ref,
                  w_s1_ref, b_s1_ref, w_s2_ref, b_s2_ref,
                  out_heads_ref, out_simclr_ref):
    # Load features in f32; downcast to bf16 only for the MXU operands.
    feats_f32 = feat_ref[...]                      # [TILE_B, D_pad] f32
    feats = feats_f32.astype(jnp.bfloat16)

    # (b) Small fused heads matmul: columns = [linear | shift_cls | joint | pad].
    heads = (
        jnp.dot(feats, w_heads_ref[...], preferred_element_type=jnp.float32)
        + b_heads_ref[...]
    )
    out_heads_ref[...] = heads                     # lane-dense [TILE_B, H_pad]

    # (a) simclr MLP.  Hidden layer never touches HBM.
    h = jnp.maximum(
        jnp.dot(feats, w_s1_ref[...], preferred_element_type=jnp.float32)
        + b_s1_ref[...],
        0.0)                                       # f32 ReLU (v5e-friendly)
    out_simclr_ref[...] = (
        jnp.dot(h.astype(jnp.bfloat16), w_s2_ref[...],
                preferred_element_type=jnp.float32)
        + b_s2_ref[...]
    )


@functools.partial(jax.jit, static_argnums=(2,))
def base_model_forward(features, packed, config):
    """BaseModel.forward(features, penultimate=True, simclr=True,
    classification=True, joint=True) with all heads fused into one kernel."""
    last_dim, num_classes, simclr_dim, tile_b = config
    B, D = features.shape

    w_heads = packed["w_heads"]        # [D_pad, H_pad] bf16
    b_heads = packed["b_heads"]        # [1, H_pad]     f32
    w_s1 = packed["w_s1_p"]            # [D_pad, D_pad] bf16
    b_s1 = packed["b_s1_p"]            # [1, D_pad]     f32
    w_s2 = packed["w_s2_p"]            # [D_pad, S_pad] bf16
    b_s2 = packed["b_s2_p"]            # [1, S_pad]     f32
    d_pad, h_pad = w_heads.shape
    s_pad = w_s2.shape[1]

    # Batch tile: >=256 for production (v6e/v7x MXU is 256-high); clamp so a
    # tiny demo batch is not padded up to 256 rows of zeros.
    tile_b = max(8, min(tile_b, _round_up(B, 8)))
    b_pad = _round_up(B, tile_b)

    # Avoid a full wrapper-side pad copy whenever shapes are already aligned.
    if D == d_pad and B == b_pad:
        feats_in = features
    elif D == d_pad:
        feats_in = jnp.pad(features, ((0, b_pad - B), (0, 0)))
    else:
        feats_in = jnp.pad(features, ((0, b_pad - B), (0, d_pad - D)))

    grid = (b_pad // tile_b,)

    # VMEM budget: bf16 weights (double-buffered by default pipelining) + f32
    # biases + double-buffered feature/output tiles, with margin; capped below
    # v7x's 64 MiB/TC physical VMEM.
    weight_bytes = 2 * (d_pad * h_pad + d_pad * d_pad + d_pad * s_pad)  # bf16
    bias_bytes = 4 * (h_pad + d_pad + s_pad)
    tile_bytes = 4 * tile_b * (d_pad + h_pad + s_pad)
    vmem_need = 2 * weight_bytes + 2 * bias_bytes + 2 * tile_bytes
    vmem_cap = 48 * 1024 * 1024
    try:
        vmem_cap = min(vmem_cap,
                       int(0.8 * pltpu.get_tpu_info().vmem_capacity_bytes))
    except Exception:
        pass
    vmem_limit = int(min(vmem_cap, max(16 * 1024 * 1024, 2 * vmem_need)))

    heads_out, simclr_out = pl.pallas_call(
        _heads_kernel,
        out_shape=(
            jax.ShapeDtypeStruct((b_pad, h_pad), jnp.float32),
            jax.ShapeDtypeStruct((b_pad, s_pad), jnp.float32),
        ),
        grid=grid,
        in_specs=[
            pl.BlockSpec((tile_b, d_pad), lambda i: (i, 0)),   # feature tile
            pl.BlockSpec((d_pad, h_pad), lambda i: (0, 0)),    # heads weight (resident)
            pl.BlockSpec((1, h_pad), lambda i: (0, 0)),        # heads bias
            pl.BlockSpec((d_pad, d_pad), lambda i: (0, 0)),    # simclr layer-1 weight
            pl.BlockSpec((1, d_pad), lambda i: (0, 0)),        # simclr layer-1 bias
            pl.BlockSpec((d_pad, s_pad), lambda i: (0, 0)),    # simclr layer-2 weight
            pl.BlockSpec((1, s_pad), lambda i: (0, 0)),        # simclr layer-2 bias
        ],
        out_specs=(
            pl.BlockSpec((tile_b, h_pad), lambda i: (i, 0)),
            pl.BlockSpec((tile_b, s_pad), lambda i: (i, 0)),
        ),
        compiler_params=pltpu.CompilerParams(
            dimension_semantics=("parallel",),
            vmem_limit_bytes=vmem_limit,
        ),
    )(feats_in, w_heads, b_heads, w_s1, b_s1, w_s2, b_s2)

    # Unpack heads; slice off batch / lane padding in the wrapper.
    out_lin = heads_out[:B, :num_classes]
    out_shift = heads_out[:B, num_classes:num_classes + 2]
    out_joint = heads_out[:B, num_classes + 2:num_classes + 2 + 4 * num_classes]
    out_simclr = simclr_out[:B, :simclr_dim]

    aux = {
        "penultimate": features,       # passthrough, no kernel round trip
        "simclr": out_simclr,
        "classification": out_shift,   # == shift_cls_layer(features) in BaseModel
        "joint": out_joint,
    }
    return out_lin, aux


def init_params(key, last_dim, num_classes=10, simclr_dim=128):
    """Deterministic synthetic parameters. Linear weights stored as [in, out]."""
    ks = jax.random.split(key, 10)

    def lin(kw, kb, fan_in, fan_out):
        bound = 1.0 / jnp.sqrt(fan_in)
        w = jax.random.uniform(kw, (fan_in, fan_out), jnp.float32, -bound, bound)
        b = jax.random.uniform(kb, (1, fan_out), jnp.float32, -bound, bound)
        return w, b

    w_lin, b_lin = lin(ks[0], ks[1], last_dim, num_classes)
    w_s1, b_s1 = lin(ks[2], ks[3], last_dim, last_dim)
    w_s2, b_s2 = lin(ks[4], ks[5], last_dim, simclr_dim)
    w_shift, b_shift = lin(ks[6], ks[7], last_dim, 2)
    w_joint, b_joint = lin(ks[8], ks[9], last_dim, 4 * num_classes)

    return {
        "w_lin": w_lin, "b_lin": b_lin,
        "w_s1": w_s1, "b_s1": b_s1,
        "w_s2": w_s2, "b_s2": b_s2,
        "w_shift": w_shift, "b_shift": b_shift,
        "w_joint": w_joint, "b_joint": b_joint,
    }


def pack_params(params, last_dim, num_classes, simclr_dim):
    """One-time packing of the heads into padded, lane-dense weight/bias pairs.

    Heads column layout: [ linear | shift_cls | joint | pad ].
    Invariant relied on for correctness: every padded row/column of the
    weights AND biases (extra K rows beyond last_dim, extra N columns beyond
    the real head widths, extra simclr hidden units beyond last_dim) is
    exactly zero, so padded lanes contribute 0 through both matmuls and the
    ReLU (ReLU(0) = 0).  Weights are stored bf16 (MXU operands), biases f32.
    """
    d_pad = _round_up(last_dim, 128)
    n_heads = num_classes + 2 + 4 * num_classes
    h_pad = _round_up(n_heads, 128)
    s_pad = _round_up(simclr_dim, 128)

    w_heads = jnp.zeros((d_pad, h_pad), jnp.float32)
    b_heads = jnp.zeros((1, h_pad), jnp.float32)
    col = 0
    w_heads = w_heads.at[:last_dim, col:col + num_classes].set(params["w_lin"])
    b_heads = b_heads.at[:, col:col + num_classes].set(params["b_lin"])
    col += num_classes
    w_heads = w_heads.at[:last_dim, col:col + 2].set(params["w_shift"])
    b_heads = b_heads.at[:, col:col + 2].set(params["b_shift"])
    col += 2
    w_heads = w_heads.at[:last_dim, col:col + 4 * num_classes].set(params["w_joint"])
    b_heads = b_heads.at[:, col:col + 4 * num_classes].set(params["b_joint"])

    w_s1 = jnp.zeros((d_pad, d_pad), jnp.float32).at[
        :last_dim, :last_dim].set(params["w_s1"])
    b_s1 = jnp.zeros((1, d_pad), jnp.float32).at[:, :last_dim].set(params["b_s1"])
    w_s2 = jnp.zeros((d_pad, s_pad), jnp.float32).at[
        :last_dim, :simclr_dim].set(params["w_s2"])
    b_s2 = jnp.zeros((1, s_pad), jnp.float32).at[:, :simclr_dim].set(params["b_s2"])

    return {
        "w_heads": w_heads.astype(jnp.bfloat16),
        "b_heads": b_heads,
        "w_s1_p": w_s1.astype(jnp.bfloat16),
        "b_s1_p": b_s1,
        "w_s2_p": w_s2.astype(jnp.bfloat16),
        "b_s2_p": b_s2,
    }


def _reference(features, p):
    out = features @ p["w_lin"] + p["b_lin"]
    h = jnp.maximum(features @ p["w_s1"] + p["b_s1"], 0.0)
    simclr = h @ p["w_s2"] + p["b_s2"]
    shift = features @ p["w_shift"] + p["b_shift"]
    joint = features @ p["w_joint"] + p["b_joint"]
    return out, features, simclr, shift, joint


if __name__ == "__main__":
    key = jax.random.PRNGKey(0)
    k_feat, k_param = jax.random.split(key)

    B, LAST_DIM, NUM_CLASSES, SIMCLR_DIM = 8, 32, 10, 128
    TILE_B = 256  # production batch tile (>=256 for v6e/v7x); clamped for tiny demo B

    # TODO(synk): `penultimate` is abstract in BaseModel; features are synthesized here.
    features = jax.random.normal(k_feat, (B, LAST_DIM), jnp.float32)
    params = init_params(k_param, LAST_DIM, NUM_CLASSES, SIMCLR_DIM)
    packed = pack_params(params, LAST_DIM, NUM_CLASSES, SIMCLR_DIM)

    config = (LAST_DIM, NUM_CLASSES, SIMCLR_DIM, TILE_B)
    output, aux = base_model_forward(features, packed, config)
    jax.block_until_ready((output, aux))

    ref_out, ref_pen, ref_simclr, ref_shift, ref_joint = _reference(features, params)
    # bf16 MXU operands -> use a relative tolerance instead of atol=3e-5.
    assert jnp.allclose(output, ref_out, rtol=2e-2, atol=2e-2)
    assert jnp.allclose(aux["penultimate"], ref_pen)
    assert jnp.allclose(aux["simclr"], ref_simclr, rtol=2e-2, atol=2e-2)
    assert jnp.allclose(aux["classification"], ref_shift, rtol=2e-2, atol=2e-2)
    assert jnp.allclose(aux["joint"], ref_joint, rtol=2e-2, atol=2e-2)

    print("KERNEL_OK")
</pallas_src>

<mosaic_0001>
module attributes {stable_mosaic.version = 11 : i64} {
  func.func @_heads_kernel(%arg0: i32, %arg1: memref<8x128xf32, #tpu.memory_space<vmem>>, %arg2: memref<128x128xbf16, #tpu.memory_space<vmem>>, %arg3: memref<1x128xf32, #tpu.memory_space<vmem>>, %arg4: memref<128x128xbf16, #tpu.memory_space<vmem>>, %arg5: memref<1x128xf32, #tpu.memory_space<vmem>>, %arg6: memref<128x128xbf16, #tpu.memory_space<vmem>>, %arg7: memref<1x128xf32, #tpu.memory_space<vmem>>, %arg8: memref<8x128xf32, #tpu.memory_space<vmem>>, %arg9: memref<8x128xf32, #tpu.memory_space<vmem>>) attributes {dimension_semantics = [#tpu.dimension_semantics<parallel>], iteration_bounds = array<i64: 1>, scalar_prefetch = 0 : i64, scratch_operands = 0 : i64, tpu.core_type = #tpu.core_type<tc>, window_params = [{transform_indices = @transform_0, window_bounds = array<i64: 8, 128>}, {pipeline_mode = #tpu.pipeline_mode<synchronous>, transform_indices = @transform_1, window_bounds = array<i64: 128, 128>}, {pipeline_mode = #tpu.pipeline_mode<synchronous>, transform_indices = @transform_2, window_bounds = array<i64: 1, 128>}, {pipeline_mode = #tpu.pipeline_mode<synchronous>, transform_indices = @transform_3, window_bounds = array<i64: 128, 128>}, {pipeline_mode = #tpu.pipeline_mode<synchronous>, transform_indices = @transform_4, window_bounds = array<i64: 1, 128>}, {pipeline_mode = #tpu.pipeline_mode<synchronous>, transform_indices = @transform_5, window_bounds = array<i64: 128, 128>}, {pipeline_mode = #tpu.pipeline_mode<synchronous>, transform_indices = @transform_6, window_bounds = array<i64: 1, 128>}, {transform_indices = @transform_7, window_bounds = array<i64: 8, 128>}, {transform_indices = @transform_8, window_bounds = array<i64: 8, 128>}]} {
    %c0 = arith.constant 0 : index
    %c0_0 = arith.constant 0 : index
    %0 = vector.load %arg1[%c0, %c0_0] : memref<8x128xf32, #tpu.memory_space<vmem>>, vector<8x128xf32>
    %1 = arith.truncf %0 : vector<8x128xf32> to vector<8x128xbf16>
    %c0_1 = arith.constant 0 : index
    %c0_2 = arith.constant 0 : index
    %2 = vector.load %arg2[%c0_1, %c0_2] : memref<128x128xbf16, #tpu.memory_space<vmem>>, vector<128x128xbf16>
    %cst = arith.constant dense<0.000000e+00> : vector<8x128xf32>
    %3 = tpu.matmul %1, %2, %cst {dimension_numbers = #tpu.dot_dimension_numbers<[1], [0], [0], [1], [0, 0, 1, 1], [], []>} : vector<8x128xbf16>, vector<128x128xbf16>, vector<8x128xf32> -> vector<8x128xf32>
    %c0_3 = arith.constant 0 : index
    %c0_4 = arith.constant 0 : index
    %4 = vector.load %arg3[%c0_3, %c0_4] : memref<1x128xf32, #tpu.memory_space<vmem>>, vector<1x128xf32>
    %5 = vector.broadcast %4 : vector<1x128xf32> to vector<8x128xf32>
    %6 = arith.addf %3, %5 : vector<8x128xf32>
    %c0_5 = arith.constant 0 : index
    %c0_6 = arith.constant 0 : index
    %7 = vector.load %arg8[%c0_5, %c0_6] : memref<8x128xf32, #tpu.memory_space<vmem>>, vector<8x128xf32>
    tpu.vector_store %arg8[%c0_5, %c0_6], %6 {strides = array<i32>} : memref<8x128xf32, #tpu.memory_space<vmem>>, vector<8x128xf32>,
    %c0_7 = arith.constant 0 : index
    %c0_8 = arith.constant 0 : index
    %8 = vector.load %arg4[%c0_7, %c0_8] : memref<128x128xbf16, #tpu.memory_space<vmem>>, vector<128x128xbf16>
    %cst_9 = arith.constant dense<0.000000e+00> : vector<8x128xf32>
    %9 = tpu.matmul %1, %8, %cst_9 {dimension_numbers = #tpu.dot_dimension_numbers<[1], [0], [0], [1], [0, 0, 1, 1], [], []>} : vector<8x128xbf16>, vector<128x128xbf16>, vector<8x128xf32> -> vector<8x128xf32>
    %c0_10 = arith.constant 0 : index
    %c0_11 = arith.constant 0 : index
    %10 = vector.load %arg5[%c0_10, %c0_11] : memref<1x128xf32, #tpu.memory_space<vmem>>, vector<1x128xf32>
    %11 = vector.broadcast %10 : vector<1x128xf32> to vector<8x128xf32>
    %12 = arith.addf %9, %11 : vector<8x128xf32>
    %cst_12 = arith.constant 0.000000e+00 : f32
    %13 = vector.broadcast %cst_12 : f32 to vector<8x128xf32>
    %14 = arith.maximumf %12, %13 : vector<8x128xf32>
    %15 = arith.truncf %14 : vector<8x128xf32> to vector<8x128xbf16>
    %c0_13 = arith.constant 0 : index
    %c0_14 = arith.constant 0 : index
    %16 = vector.load %arg6[%c0_13, %c0_14] : memref<128x128xbf16, #tpu.memory_space<vmem>>, vector<128x128xbf16>
    %cst_15 = arith.constant dense<0.000000e+00> : vector<8x128xf32>
    %17 = tpu.matmul %15, %16, %cst_15 {dimension_numbers = #tpu.dot_dimension_numbers<[1], [0], [0], [1], [0, 0, 1, 1], [], []>} : vector<8x128xbf16>, vector<128x128xbf16>, vector<8x128xf32> -> vector<8x128xf32>
    %c0_16 = arith.constant 0 : index
    %c0_17 = arith.constant 0 : index
    %18 = vector.load %arg7[%c0_16, %c0_17] : memref<1x128xf32, #tpu.memory_space<vmem>>, vector<1x128xf32>
    %19 = vector.broadcast %18 : vector<1x128xf32> to vector<8x128xf32>
    %20 = arith.addf %17, %19 : vector<8x128xf32>
    %c0_18 = arith.constant 0 : index
    %c0_19 = arith.constant 0 : index
    %21 = vector.load %arg9[%c0_18, %c0_19] : memref<8x128xf32, #tpu.memory_space<vmem>>, vector<8x128xf32>
    tpu.vector_store %arg9[%c0_18, %c0_19], %20 {strides = array<i32>} : memref<8x128xf32, #tpu.memory_space<vmem>>, vector<8x128xf32>,
    return
  }
  func.func @transform_0(%arg0: i32) -> (i32, i32) {
    %c0_i32 = arith.constant 0 : i32
    %c0_i32_0 = arith.constant 0 : i32
    return %arg0, %c0_i32 : i32, i32
  }
  func.func @transform_1(%arg0: i32) -> (i32, i32) {
    %c0_i32 = arith.constant 0 : i32
    %c0_i32_0 = arith.constant 0 : i32
    %c0_i32_1 = arith.constant 0 : i32
    return %c0_i32, %c0_i32_0 : i32, i32
  }
  func.func @transform_2(%arg0: i32) -> (i32, i32) {
    %c0_i32 = arith.constant 0 : i32
    %c0_i32_0 = arith.constant 0 : i32
    %c0_i32_1 = arith.constant 0 : i32
    return %c0_i32, %c0_i32_0 : i32, i32
  }
  func.func @transform_3(%arg0: i32) -> (i32, i32) {
    %c0_i32 = arith.constant 0 : i32
    %c0_i32_0 = arith.constant 0 : i32
    %c0_i32_1 = arith.constant 0 : i32
    return %c0_i32, %c0_i32_0 : i32, i32
  }
  func.func @transform_4(%arg0: i32) -> (i32, i32) {
    %c0_i32 = arith.constant 0 : i32
    %c0_i32_0 = arith.constant 0 : i32
    %c0_i32_1 = arith.constant 0 : i32
    return %c0_i32, %c0_i32_0 : i32, i32
  }
  func.func @transform_5(%arg0: i32) -> (i32, i32) {
    %c0_i32 = arith.constant 0 : i32
    %c0_i32_0 = arith.constant 0 : i32
    %c0_i32_1 = arith.constant 0 : i32
    return %c0_i32, %c0_i32_0 : i32, i32
  }
  func.func @transform_6(%arg0: i32) -> (i32, i32) {
    %c0_i32 = arith.constant 0 : i32
    %c0_i32_0 = arith.constant 0 : i32
    %c0_i32_1 = arith.constant 0 : i32
    return %c0_i32, %c0_i32_0 : i32, i32
  }
  func.func @transform_7(%arg0: i32) -> (i32, i32) {
    %c0_i32 = arith.constant 0 : i32
    %c0_i32_0 = arith.constant 0 : i32
    return %arg0, %c0_i32 : i32, i32
  }
  func.func @transform_8(%arg0: i32) -> (i32, i32) {
    %c0_i32 = arith.constant 0 : i32
    %c0_i32_0 = arith.constant 0 : i32
    return %arg0, %c0_i32 : i32, i32
  }
}

</mosaic_0001>

<bundles_post_ra>
// kernel: base_model_forward.1
= control target key start
LH: loop header
LB: loop body
LE: loop exit
PB: predicated region body
PF: predicated region fallthrough
CT: control target
= control target key end

     0   :  { %14 = vsyncpa [#allocation3], 0  ;;  %s832_s0 = inlined_call_operand.vmem [shape: f32[8,128], index: 0, kind: input, shape index: {}]   ;;  %s833_s1 = inlined_call_operand.hbm [shape: bf16[128,128], index: 1, kind: input, shape index: {}]   ;;  %s834_s2 = inlined_call_operand.vmem [shape: f32[1,128], index: 2, kind: input, shape index: {}]   ;;  %s835_s3 = inlined_call_operand.hbm [shape: bf16[128,128], index: 3, kind: input, shape index: {}]   ;;  %s836_s4 = inlined_call_operand.vmem [shape: f32[1,128], index: 4, kind: input, shape index: {}]   ;;  %s837_s5 = inlined_call_operand.hbm [shape: bf16[128,128], index: 5, kind: input, shape index: {}]   ;;  %s838_s6 = inlined_call_operand.vmem [shape: f32[1,128], index: 6, kind: input, shape index: {}]   ;;  %s839_s7 = inlined_call_operand.vmem [shape: f32[8,128], index: 7, kind: output, shape index: {0}]   ;;  %s840_s8 = inlined_call_operand.hbm [shape: f32[8,128], index: 8, kind: output, shape index: {1}]  }
   0x1   :  { %15 = vsyncpa [#allocation6], 0 }
   0x2   :  { %16 = vsyncpa [#allocation4], 0  ;;  %s670_s27 = smov [#allocation5]   ;;  %s671_s29 = smov [#allocation2]  }
   0x3   :  { %s38_s28 = sshll.u32 %s670_s27, 4  ;;  %s24_s30 = sshll.u32 %s671_s29, 4  ;;  %s39_s28 = int_to_ptr.vmem [resolvable:$true] %s38_s28  ;;  %s723_s30 = int_to_ptr.vmem [resolvable:$true] %s24_s30 }
   0x4   :  { %s576_s11 = scalar_lea.hbm %s835_s3, 1024 }
   0x5   :  { %p577_p0 = scmp.ne.s32.totalorder %s835_s3, %s576_s11  ;;  %p580_p1 = scmp.lt.u32.totalorder %s576_s11, %s835_s3 }
   0x7   :  { %p582_p2 = pnand %p580_p1, %p577_p0 }
   0x9   :  { %585 = shalt.err (!%p582_p2)
}
   0xa   :  { %s586_s16 = scalar_lea.vmem %s39_s28, 1024  ;;  %p591_p4 = scmp.lt.s32.totalorder %s39_s28, %s39_s28 }
   0xb   :  { %p587_p3 = scmp.ne.s32.totalorder %s39_s28, %s586_s16  ;;  %p592_p5 = scmp.lt.s32.totalorder %s586_s16, %s586_s16 }
   0xd   :  { %p593_p6 = por %p592_p5, %p591_p4 }
   0xf   :  { %p594_p7 = pnand %p593_p6, %p587_p3 }
  0x11   :  { %597 = shalt.err (!%p594_p7)
}
  0x12   :  { %s672_s17 = smov 64   ;;  %s673_s18 = smov 4  }
  0x13   :  { %44 = dma.hbm_to_vmem [thread:$0]  %s835_s3, 1024, %s39_s28, [#allocation6], %s672_s17, %s672_s17, %s673_s18  }
  0x14   :  { %s598_s23 = scalar_lea.hbm %s833_s1, 1024 }
  0x15   :  { %p599_p8 = scmp.ne.s32.totalorder %s833_s1, %s598_s23  ;;  %p602_p9 = scmp.lt.u32.totalorder %s598_s23, %s833_s1 }
  0x17   :  { %p604_p10 = pnand %p602_p9, %p599_p8 }
  0x19   :  { %607 = shalt.err (!%p604_p10)
}
  0x1a   :  { %s608_s29 = scalar_lea.vmem %s723_s30, 1024  ;;  %p613_p12 = scmp.lt.s32.totalorder %s723_s30, %s723_s30 }
  0x1b   :  { %p609_p11 = scmp.ne.s32.totalorder %s723_s30, %s608_s29  ;;  %p614_p13 = scmp.lt.s32.totalorder %s608_s29, %s608_s29 }
  0x1d   :  { %p615_p0 = por %p614_p13, %p613_p12 }
  0x1f   :  { %p616_p1 = pnand %p615_p0, %p609_p11 }
  0x21   :  { %619 = shalt.err (!%p616_p1)
}
  0x22   :  { %30 = dma.hbm_to_vmem [thread:$0]  %s833_s1, 1024, %s723_s30, [#allocation3], %s672_s17, %s672_s17, %s673_s18  }
  0x23   :  { %s674_s9 = smov [#allocation7]   ;;  %s620_s13 = scalar_lea.hbm %s837_s5, 1024 }
  0x24   :  { %s52_s10 = sshll.u32 %s674_s9, 4  ;;  %p621_p2 = scmp.ne.s32.totalorder %s837_s5, %s620_s13  ;;  %s53_s10 = int_to_ptr.vmem [resolvable:$true] %s52_s10 }
  0x25   :  { %p624_p3 = scmp.lt.u32.totalorder %s620_s13, %s837_s5 }
  0x27   :  { %p626_p4 = pnand %p624_p3, %p621_p2 }
  0x29   :  { %629 = shalt.err (!%p626_p4)
}
  0x2a   :  { %s630_s20 = scalar_lea.vmem %s53_s10, 1024  ;;  %p635_p6 = scmp.lt.s32.totalorder %s53_s10, %s53_s10 }
  0x2b   :  { %p631_p5 = scmp.ne.s32.totalorder %s53_s10, %s630_s20  ;;  %p636_p7 = scmp.lt.s32.totalorder %s630_s20, %s630_s20 }
  0x2d   :  { %p637_p8 = por %p636_p7, %p635_p6 }
  0x2f   :  { %p638_p9 = pnand %p637_p8, %p631_p5 }
  0x31   :  { %641 = shalt.err (!%p638_p9)
}
  0x32   :  { %58 = dma.hbm_to_vmem [thread:$0]  %s837_s5, 1024, %s53_s10, [#allocation6], %s672_s17, %s672_s17, %s673_s18  }
  0x33   :  { %664 = dma.done.wait [#allocation3], 1024  }
  0x34   :  { %665 = vsyncadd [#allocation3], 4294966272 }
  0x35   :  { %666 = dma.done.wait [#allocation6], 2048  }
  0x36   :  { %667 = vsyncadd [#allocation6], 4294965248  ;;  %v675_v0 = vmov 0.0   ;;  %vm676_vm0 = vmmov 0   ;;  %v552_v1 = vld [vmem:[#allocation5] sm:$0xff]   ;;  %v553_v2 = vld [vmem:[#allocation5 + $0x8] sm:$0xff]  }
  0x37   :  { %504 = vmatprep.subr.bf16.mxu1 %v675_v0  ;;  %520 = vmatprep.mubr.msk.bf16.mxu1 %vm676_vm0, %v675_v0  ;;  %v554_v3 = vld [vmem:[#allocation5 + $0x10] sm:$0xff]   ;;  %v560_v4 = vld [vmem:[#allocation2] sm:$0xff]   ;;  %v555_v5 = vld [vmem:[#allocation5 + $0x18] sm:$0xff]   ;;  %s677_s26 = smov [#allocation8]  }
  0x38   :  { %484 = vmatprep.subr.bf16.mxu0 %v675_v0  ;;  %500 = vmatprep.mubr.msk.bf16.mxu0 %vm676_vm0, %v675_v0  ;;  %v561_v6 = vld [vmem:[#allocation2 + $0x8] sm:$0xff]   ;;  %v556_v7 = vld [vmem:[#allocation5 + $0x20] sm:$0xff]   ;;  %v562_v8 = vld [vmem:[#allocation2 + $0x10] sm:$0xff]   ;;  %s418_s27 = sshll.u32 %s677_s26, 4  ;;  %s419_s27 = int_to_ptr.vmem [resolvable:$true] %s418_s27 }
  0x39   :  { %505 = vmatpush3.bf16.msra.mxu1 %v552_v1  ;;  %485 = vmatpush3.bf16.msra.mxu0 %v560_v4  ;;  %v557_v9 = vld [vmem:[#allocation5 + $0x28] sm:$0xff]   ;;  %v563_v10 = vld [vmem:[#allocation2 + $0x18] sm:$0xff]   ;;  %v558_v11 = vld [vmem:[#allocation5 + $0x30] sm:$0xff]   ;;  %p647_p11 = scmp.lt.s32.totalorder %s419_s27, %s419_s27 }
  0x3a   :  { %506 = vmatprep.subr.bf16.mxu1 %v675_v0  ;;  %486 = vmatprep.subr.bf16.mxu0 %v675_v0  ;;  %v564_v12 = vld [vmem:[#allocation2 + $0x20] sm:$0xff]   ;;  %v559_v13 = vld [vmem:[#allocation5 + $0x38] sm:$0xff]   ;;  %v565_v15 = vld [vmem:[#allocation2 + $0x28] sm:$0xff]  }
  0x3b   :  { %v71_v14 = vld [vmem:[%s832_s0] sm:$0xff]  ;;  %v566_v17 = vld [vmem:[#allocation2 + $0x30] sm:$0xff]   ;;  %v567_v18 = vld [vmem:[#allocation2 + $0x38] sm:$0xff]  }
  0x3c   :  { %v72_v16 = vpack.c.bf16 %v71_v14, %v71_v14  ;;  %v568_v19 = vld [vmem:[#allocation7] sm:$0xff]   ;;  %v569_v20 = vld [vmem:[#allocation7 + $0x8] sm:$0xff]   ;;  %v570_v21 = vld [vmem:[#allocation7 + $0x10] sm:$0xff]  }
  0x3d   :  { %507 = vmatpush3.bf16.msra.mxu1 %v553_v2  ;;  %487 = vmatpush3.bf16.msra.mxu0 %v561_v6  ;;  %v571_v22 = vld [vmem:[#allocation7 + $0x18] sm:$0xff]   ;;  %v572_v23 = vld [vmem:[#allocation7 + $0x20] sm:$0xff]   ;;  %v573_v24 = vld [vmem:[#allocation7 + $0x28] sm:$0xff]  }
  0x3e   :  { %508 = vmatprep.subr.bf16.mxu1 %v675_v0  ;;  %488 = vmatprep.subr.bf16.mxu0 %v675_v0  ;;  %v574_v25 = vld [vmem:[#allocation7 + $0x30] sm:$0xff]   ;;  %v575_v26 = vld [vmem:[#allocation7 + $0x38] sm:$0xff]   ;;  %v439_v27 = vld [vmem:[%s836_s4] ss:$0 sm:$0xff] }
  0x3f   :  { %v430_v35 = vld [vmem:[%s834_s2] ss:$0 sm:$0xff]  ;;  %s642_s2 = scalar_lea.vmem %s419_s27, 128 }
  0x40   :  { %v448_v41 = vld [vmem:[%s838_s6] ss:$0 sm:$0xff]  ;;  %p643_p10 = scmp.ne.s32.totalorder %s419_s27, %s642_s2  ;;  %p648_p12 = scmp.lt.s32.totalorder %s642_s2, %s642_s2 }
  0x41   :  { %509 = vmatpush3.bf16.msra.mxu1 %v554_v3  ;;  %489 = vmatpush3.bf16.msra.mxu0 %v562_v8 }
  0x42   :  { %510 = vmatprep.subr.bf16.mxu1 %v675_v0  ;;  %490 = vmatprep.subr.bf16.mxu0 %v675_v0  ;;  %p649_p13 = por %p648_p12, %p647_p11 }
  0x44   :  { %p650_p0 = pnand %p649_p13, %p643_p10 }
  0x45   :  { %511 = vmatpush3.bf16.msra.mxu1 %v555_v5  ;;  %491 = vmatpush3.bf16.msra.mxu0 %v563_v10 }
  0x46   :  { %512 = vmatprep.subr.bf16.mxu1 %v675_v0  ;;  %492 = vmatprep.subr.bf16.mxu0 %v675_v0 }
  0x49   :  { %513 = vmatpush3.bf16.msra.mxu1 %v556_v7  ;;  %493 = vmatpush3.bf16.msra.mxu0 %v564_v12 }
  0x4a   :  { %514 = vmatprep.subr.bf16.mxu1 %v675_v0  ;;  %494 = vmatprep.subr.bf16.mxu0 %v675_v0 }
  0x4d   :  { %515 = vmatpush3.bf16.msra.mxu1 %v557_v9  ;;  %495 = vmatpush3.bf16.msra.mxu0 %v565_v15 }
  0x4e   :  { %516 = vmatprep.subr.bf16.mxu1 %v675_v0  ;;  %496 = vmatprep.subr.bf16.mxu0 %v675_v0 }
  0x51   :  { %517 = vmatpush3.bf16.msra.mxu1 %v558_v11  ;;  %497 = vmatpush3.bf16.msra.mxu0 %v566_v17 }
  0x52   :  { %518 = vmatprep.subr.bf16.mxu1 %v675_v0  ;;  %498 = vmatprep.subr.bf16.mxu0 %v675_v0 }
  0x55   :  { %519 = vmatpush3.bf16.msra.mxu1 %v559_v13  ;;  %499 = vmatpush3.bf16.msra.mxu0 %v567_v18 }
  0x56   :  { %524 = vmatprep.subr.bf16.mxu0 %v675_v0 }
  0x58   :  { %521 = vmatmul.mubr.bf16.vlgmr.msra.gmra.mrb[0].mxu1 %v72_v16  ;;  %501 = vmatmul.mubr.bf16.vlgmr.msra.gmra.mrb[0].mxu0 %v72_v16 }
  0x59   :  { %525 = vmatpush3.bf16.msra.mxu0 %v568_v19  ;;  %540 = vmatprep.mubr.msk.bf16.mxu0 %vm676_vm0, %v675_v0 }
  0x5a   :  { %526 = vmatprep.subr.bf16.mxu0 %v675_v0 }
  0x5d   :  { %527 = vmatpush3.bf16.msra.mxu0 %v569_v20 }
  0x5e   :  { %528 = vmatprep.subr.bf16.mxu0 %v675_v0 }
  0x61   :  { %529 = vmatpush3.bf16.msra.mxu0 %v570_v21 }
  0x62   :  { %530 = vmatprep.subr.bf16.mxu0 %v675_v0 }
  0x65   :  { %531 = vmatpush3.bf16.msra.mxu0 %v571_v22 }
  0x66   :  { %532 = vmatprep.subr.bf16.mxu0 %v675_v0 }
  0x69   :  { %533 = vmatpush3.bf16.msra.mxu0 %v572_v23 }
  0x6a   :  { %534 = vmatprep.subr.bf16.mxu0 %v675_v0 }
  0x6d   :  { %535 = vmatpush3.bf16.msra.mxu0 %v573_v24 }
  0x6e   :  { %536 = vmatprep.subr.bf16.mxu0 %v675_v0 }
  0x71   :  { %537 = vmatpush3.bf16.msra.mxu0 %v574_v25 }
  0x72   :  { %538 = vmatprep.subr.bf16.mxu0 %v675_v0 }
  0x75   :  { %539 = vmatpush3.bf16.msra.mxu0 %v575_v26 }
 0x12b   :  { %v290_v28 = vpop.f32.mrb[0].mxu1  ;;  %v178_v36 = vpop.f32.mrb[0].mxu0 }
 0x12c   :  { %v291_v29 = vadd.f32 %v439_v27, %v290_v28  ;;  %v522_v30 = vpop.f32.mrb[1].mxu1  ;;  %v179_v37 = vadd.f32 %v430_v35, %v178_v36  ;;  %v502_v38 = vpop.f32.mrb[1].mxu0 }
 0x12d   :  { %v293_v31 = vpop.f32.mrb[2].mxu1  ;;  %v181_v39 = vpop.f32.mrb[2].mxu0 }
 0x12e   :  { %v296_v32 = vmax.f32 %v291_v29, 0.0  ;;  %v523_v33 = vpop.f32.mrb[3].mxu1  ;;  %184 = vst [vmem:[%s839_s7] sm:$0xff] %v179_v37  ;;  %v503_v40 = vpop.f32.mrb[3].mxu0 }
 0x130   :  { %v297_v34 = vpack.c.bf16 %v296_v32, %v296_v32 }
 0x132   :  { %541 = vmatmul.mubr.bf16.vlgmr.msra.gmra.mrb[4].mxu0 %v297_v34 }
 0x205   :  { %v403_v42 = vpop.f32.mrb[4].mxu0 }
 0x206   :  { %v404_v43 = vadd.f32 %v448_v41, %v403_v42  ;;  %v542_v44 = vpop.f32.mrb[5].mxu0 }
 0x207   :  { %v406_v45 = vpop.f32.mrb[6].mxu0 }
 0x208   :  { %409 = vst [vmem:[#allocation8] sm:$0xff] %v404_v43  ;;  %v543_v46 = vpop.f32.mrb[7].mxu0 }
 0x209   :  { %653 = shalt.err (!%p650_p0)
}
 0x20a   :  { %s654_s6 = scalar_lea.hbm %s840_s8, 128 }
 0x20b   :  { %p655_p1 = scmp.ne.s32.totalorder %s840_s8, %s654_s6  ;;  %p658_p2 = scmp.lt.u32.totalorder %s654_s6, %s840_s8 }
 0x20d   :  { %p660_p3 = pnand %p658_p2, %p655_p1 }
 0x20f   :  { %663 = shalt.err (!%p660_p3)
}
 0x210   :  { %421 = dma.vmem_to_hbm [thread:$0]  %s419_s27, 128, %s840_s8, [#allocation4]  }
 0x211   :  { %668 = dma.done.wait [#allocation4], 128  }
 0x212   :  { %669 = vsyncadd [#allocation4], 4294967168 }
 0x213   :  { %427 = vsyncpa [#allocation3], 1 }
 0x214   :  { %428 = vsyncpa [#allocation6], 1 }
 0x215   :  { %429 = vsyncpa [#allocation4], 1 }

</bundles_post_ra>
